<compile_context>
chip_gen: v5e
topology: v5e:2x2
jax: 0.10.0
libtpu: 0.0.40
codegen_flags: <defaults>
</compile_context>

<pallas_src>
import functools

import jax
import jax.numpy as jnp
from jax.experimental import pallas as pl
from jax.experimental.pallas import tpu as pltpu


def _round_up(x: int, m: int) -> int:
    return ((x + m - 1) // m) * m


def _fused_readout_kernel(total_q_ref,                          # SMEM (1,) f32
                          ht_ref, w1_ref, b1_ref, w2_ref, b2_ref,
                          q_ref,                                # (1, tile) block of (1, n_atoms)
                          esis_ref, acc_ref,                    # VMEM scratch
                          *, n_atoms: int, tile: int):
    """Pass 0: MLP + per-atom (e/s, 1/s) + masked global sums (kept in VMEM).
    Pass 1: q = (1/s) * c - e/s with c = (Q_total + sum e/s) / sum 1/s."""
    p = pl.program_id(0)    # pass: 0 = MLP + sums, 1 = charge finalize
    t = pl.program_id(1)    # atom tile

    @pl.when(p == 0)
    def _stage_mlp():
        @pl.when(t == 0)
        def _init():
            acc_ref[...] = jnp.zeros_like(acc_ref)

        # readout_layers: Linear -> ReLU -> Linear, atom-minor (lane-dense).
        # f32 accumulation on the MXU; only h/W1 may be bf16.
        z1 = jnp.dot(w1_ref[...], ht_ref[...],
                     preferred_element_type=jnp.float32)            # [H, T]
        a1 = jnp.maximum(z1 + b1_ref[...], 0.0)                     # f32 (no bf16 repack)
        z2 = jnp.dot(w2_ref[...], a1,
                     preferred_element_type=jnp.float32) + b2_ref[...]   # [2, T]

        e = z2[0:1, :]                     # electronegativity
        s = z2[1:2, :]                     # hardness (precondition: > 0 for a trained model)
        inv_s = pl.reciprocal(s, approx=True)                       # EUP slot
        inv_s = inv_s * (2.0 - s * inv_s)                           # Newton step -> ~f32
        e_over_s = e * inv_s

        # Mask padded atoms of the last tile so the fused sums stay exact.
        lane = jax.lax.broadcasted_iota(jnp.int32, (1, tile), 1) + t * tile
        valid = lane < n_atoms
        e_over_s = jnp.where(valid, e_over_s, 0.0)
        inv_s = jnp.where(valid, inv_s, 0.0)

        esis = jnp.concatenate([e_over_s, inv_s], axis=0)           # [2, T]
        esis_ref[t] = esis                                          # single lane-dense store
        acc_ref[...] += jnp.sum(esis, axis=1, keepdims=True)        # [2, 1] running sums

        # Keep every output write-back defined (multi-tile grids write this
        # block back once per pass; pass 1 overwrites it with the charges).
        q_ref[...] = jnp.zeros_like(q_ref)

    @pl.when(p == 1)
    def _stage_charges():
        esis = esis_ref[t]                                          # [2, T]
        c = (total_q_ref[0] + acc_ref[0:1, 0:1]) / acc_ref[1:2, 0:1]  # (1, 1)
        q_ref[...] = esis[1:2, :] * c - esis[0:1, :]


def _default_mxu_dtype():
    """bf16 MXU inputs on v6e / v7x (native bf16 MXU+VPU), f32 elsewhere."""
    try:
        dev = jax.devices()[0]
        if dev.platform != "tpu":
            return jnp.float32
        kind = dev.device_kind.lower()
    except Exception:
        return jnp.float32
    return jnp.bfloat16 if ("v6" in kind or "v7" in kind) else jnp.float32


def readout_module_forward(h, w1, b1, w2, b2, total_charge, *,
                           max_tile: int = 2048, mxu_dtype=None):
    """ReadoutModule forward: PoolAtomFeatures -> Linear/ReLU/Linear -> ComputePartialCharges.

    h:  [n_atoms, in_feats] f32 node features (graph-convolution output).
    w1: [hidden, in_feats], b1: [hidden]   (PyTorch nn.Linear layout)
    w2: [n_out, hidden],    b2: [n_out]    (n_out = 2: electronegativity, hardness)
    total_charge: [1] f32.  Returns per-atom charges, shape [n_atoms, 1] f32.
    """
    n_atoms, in_feats = h.shape
    hidden = w1.shape[0]
    n_out = w2.shape[0]

    if mxu_dtype is None:
        mxu_dtype = _default_mxu_dtype()

    # Lane-dense (atom-minor) layout: one wrapper-side transpose of h (layout
    # plumbing, fused with the optional bf16 cast).  Weights keep [out, in].
    ht = h.T                                                   # [in_feats, n_atoms]
    w1_k = w1
    b1_k = b1.reshape(hidden, 1).astype(jnp.float32)
    w2_k = w2.astype(jnp.float32)
    b2_k = b2.reshape(n_out, 1).astype(jnp.float32)
    if jnp.dtype(mxu_dtype) != jnp.dtype(jnp.float32):
        ht = ht.astype(mxu_dtype)       # halves h's HBM bytes on v6e/v7x
        w1_k = w1_k.astype(mxu_dtype)

    tile = min(_round_up(n_atoms, 128), _round_up(max_tile, 128))
    num_tiles = pl.cdiv(n_atoms, tile)          # 1 for typical molecules
    grid = (2, num_tiles)                       # (pass, atom tile); pass 0 then pass 1

    kernel = functools.partial(_fused_readout_kernel, n_atoms=n_atoms, tile=tile)

    q_row = pl.pallas_call(
        kernel,
        out_shape=jax.ShapeDtypeStruct((1, n_atoms), jnp.float32),
        grid=grid,
        in_specs=[
            pl.BlockSpec((1,), lambda p, t: (0,),
                         memory_space=pltpu.MemorySpace.SMEM),        # total charge
            pl.BlockSpec((in_feats, tile), lambda p, t: (0, t)),      # streamed node features
            pl.BlockSpec((hidden, in_feats), lambda p, t: (0, 0)),    # resident weights
            pl.BlockSpec((hidden, 1), lambda p, t: (0, 0)),
            pl.BlockSpec((n_out, hidden), lambda p, t: (0, 0)),
            pl.BlockSpec((n_out, 1), lambda p, t: (0, 0)),
        ],
        out_specs=pl.BlockSpec((1, tile), lambda p, t: (0, t)),
        scratch_shapes=[
            pltpu.VMEM((num_tiles, 2, tile), jnp.float32),   # per-atom (e/s, 1/s)
            pltpu.VMEM((2, 1), jnp.float32),                 # [sum e/s, sum 1/s]
        ],
        compiler_params=pltpu.CompilerParams(
            dimension_semantics=("arbitrary", "arbitrary"),  # fused reduction is sequential
            vmem_limit_bytes=32 * 1024 * 1024,               # safe on v5e/v6e/v7x; footprint <1 MiB
        ),
    )(total_charge.astype(jnp.float32), ht, w1_k, b1_k, w2_k, b2_k)

    # Match the PyTorch module's [n_atoms, 1] shape (order-preserving reshape).
    return q_row.reshape(n_atoms, 1)


def reference_forward(h, w1, b1, w2, b2, total_charge):
    """Pure-JAX reference mirroring the PyTorch semantics (full f32 precision)."""
    x = h                                                     # PoolAtomFeatures
    x = jnp.maximum(jnp.dot(x, w1.T, precision=jax.lax.Precision.HIGHEST) + b1, 0.0)
    x = jnp.dot(x, w2.T, precision=jax.lax.Precision.HIGHEST) + b2
    e, s = x[:, 0:1], x[:, 1:2]                               # ComputePartialCharges
    inv_s = 1.0 / s
    e_over_s = e * inv_s
    return -e_over_s + inv_s * (total_charge[0] + jnp.sum(e_over_s)) / jnp.sum(inv_s)


if __name__ == "__main__":
    in_feats, hidden, n_out = 32, 64, 2

    key = jax.random.PRNGKey(0)
    k_h, k_w1, k_b1, k_w2, k_b2, k_h2 = jax.random.split(key, 6)

    # PyTorch nn.Linear layout: W [out, in], b [out].
    w1 = 0.1 * jax.random.normal(k_w1, (hidden, in_feats), dtype=jnp.float32)
    b1 = 0.1 * jax.random.normal(k_b1, (hidden,), dtype=jnp.float32)
    w2 = 0.1 * jax.random.normal(k_w2, (n_out, hidden), dtype=jnp.float32)
    b2 = 0.1 * jax.random.normal(k_b2, (n_out,), dtype=jnp.float32)
    b2 = b2.at[1].add(2.0)         # trained charge models emit positive hardness
    total_charge = jnp.array([0.0], dtype=jnp.float32)

    # 700-atom "molecule": multi-vreg, non-multiple of 128 -> exercises the
    # masked tail of the single 768-wide tile.
    n_atoms = 700
    h = jax.random.normal(k_h, (n_atoms, in_feats), dtype=jnp.float32)
    ref = reference_forward(h, w1, b1, w2, b2, total_charge)

    # f32 MXU path.
    fwd_f32 = jax.jit(functools.partial(readout_module_forward, mxu_dtype=jnp.float32))
    out_f32 = jax.block_until_ready(fwd_f32(h, w1, b1, w2, b2, total_charge))
    assert out_f32.shape == (n_atoms, 1)
    assert bool(jnp.allclose(out_f32, ref, atol=1e-3, rtol=1e-3))
    # Charge equilibration must conserve total charge.
    assert abs(float(jnp.sum(out_f32)) - float(total_charge[0])) < 1e-2

    # bf16-MXU-input path (v6e/v7x throughput; only h/W1 are bf16, f32 accumulate).
    fwd_bf16 = jax.jit(functools.partial(readout_module_forward, mxu_dtype=jnp.bfloat16))
    out_bf16 = jax.block_until_ready(fwd_bf16(h, w1, b1, w2, b2, total_charge))
    assert out_bf16.shape == (n_atoms, 1)
    assert bool(jnp.allclose(out_bf16, ref, atol=5e-2, rtol=5e-2))
    assert abs(float(jnp.sum(out_bf16)) - float(total_charge[0])) < 1e-2   # conserved in bf16 too

    # Small odd-sized molecule (masking path) with the per-generation default dtype.
    n_small = 37
    h_small = jax.random.normal(k_h2, (n_small, in_feats), dtype=jnp.float32)
    ref_small = reference_forward(h_small, w1, b1, w2, b2, total_charge)
    fwd_auto = jax.jit(readout_module_forward)
    out_small = jax.block_until_ready(fwd_auto(h_small, w1, b1, w2, b2, total_charge))
    assert out_small.shape == (n_small, 1)
    assert bool(jnp.allclose(out_small, ref_small, atol=5e-2, rtol=5e-2))

    print("KERNEL_OK")
</pallas_src>

<mosaic_0001>
module attributes {stable_mosaic.version = 11 : i64} {
  func.func @_fused_readout_kernel(%arg0: i32, %arg1: i32, %arg2: memref<1xf32, #tpu.memory_space<smem>>, %arg3: memref<32x768xf32, #tpu.memory_space<vmem>>, %arg4: memref<64x32xf32, #tpu.memory_space<vmem>>, %arg5: memref<64x1xf32, #tpu.memory_space<vmem>>, %arg6: memref<2x64xf32, #tpu.memory_space<vmem>>, %arg7: memref<2x1xf32, #tpu.memory_space<vmem>>, %arg8: memref<1x768xf32, #tpu.memory_space<vmem>>, %arg9: memref<1x2x768xf32, #tpu.memory_space<vmem>>, %arg10: memref<2x1xf32, #tpu.memory_space<vmem>>) attributes {dimension_semantics = [#tpu.dimension_semantics<arbitrary>, #tpu.dimension_semantics<arbitrary>], iteration_bounds = array<i64: 2, 1>, scalar_prefetch = 0 : i64, scratch_operands = 2 : i64, tpu.core_type = #tpu.core_type<tc>, window_params = [{transform_indices = @transform_0, window_bounds = array<i64: 1>}, {transform_indices = @transform_1, window_bounds = array<i64: 32, 768>}, {pipeline_mode = #tpu.pipeline_mode<synchronous>, transform_indices = @transform_2, window_bounds = array<i64: 64, 32>}, {pipeline_mode = #tpu.pipeline_mode<synchronous>, transform_indices = @transform_3, window_bounds = array<i64: 64, 1>}, {pipeline_mode = #tpu.pipeline_mode<synchronous>, transform_indices = @transform_4, window_bounds = array<i64: 2, 64>}, {pipeline_mode = #tpu.pipeline_mode<synchronous>, transform_indices = @transform_5, window_bounds = array<i64: 2, 1>}, {transform_indices = @transform_6, window_bounds = array<i64: 1, 768>}]} {
    %c0_i32 = arith.constant 0 : i32
    %0 = arith.cmpi eq, %arg0, %c0_i32 : i32
    %1 = arith.extui %0 : i1 to i32
    %c0_i32_0 = arith.constant 0 : i32
    %2 = arith.cmpi ne, %1, %c0_i32_0 : i32
    scf.if %2 {
      %c0_i32_2 = arith.constant 0 : i32
      %6 = arith.cmpi eq, %arg1, %c0_i32_2 : i32
      %7 = arith.extui %6 : i1 to i32
      %c0_i32_3 = arith.constant 0 : i32
      %8 = arith.cmpi ne, %7, %c0_i32_3 : i32
      scf.if %8 {
        %cst_28 = arith.constant 0.000000e+00 : f32
        %52 = vector.broadcast %cst_28 : f32 to vector<2x1xf32>
        %c0_29 = arith.constant 0 : index
        %c0_30 = arith.constant 0 : index
        %53 = vector.load %arg10[%c0_29, %c0_30] : memref<2x1xf32, #tpu.memory_space<vmem>>, vector<2x1xf32>
        tpu.vector_store %arg10[%c0_29, %c0_30], %52 {strides = array<i32>} : memref<2x1xf32, #tpu.memory_space<vmem>>, vector<2x1xf32>,
      } else {
      }
      %c0 = arith.constant 0 : index
      %c0_4 = arith.constant 0 : index
      %9 = vector.load %arg4[%c0, %c0_4] : memref<64x32xf32, #tpu.memory_space<vmem>>, vector<64x32xf32>
      %c0_5 = arith.constant 0 : index
      %c0_6 = arith.constant 0 : index
      %10 = vector.load %arg3[%c0_5, %c0_6] : memref<32x768xf32, #tpu.memory_space<vmem>>, vector<32x768xf32>
      %cst = arith.constant dense<0.000000e+00> : vector<64x768xf32>
      %11 = tpu.matmul %9, %10, %cst {dimension_numbers = #tpu.dot_dimension_numbers<[1], [0], [0], [1], [0, 0, 1, 1], [], []>} : vector<64x32xf32>, vector<32x768xf32>, vector<64x768xf32> -> vector<64x768xf32>
      %c0_7 = arith.constant 0 : index
      %c0_8 = arith.constant 0 : index
      %12 = vector.load %arg5[%c0_7, %c0_8] : memref<64x1xf32, #tpu.memory_space<vmem>>, vector<64x1xf32>
      %13 = vector.broadcast %12 : vector<64x1xf32> to vector<64x768xf32>
      %14 = arith.addf %11, %13 : vector<64x768xf32>
      %cst_9 = arith.constant 0.000000e+00 : f32
      %15 = vector.broadcast %cst_9 : f32 to vector<64x768xf32>
      %16 = arith.maximumf %14, %15 : vector<64x768xf32>
      %c0_10 = arith.constant 0 : index
      %c0_11 = arith.constant 0 : index
      %17 = vector.load %arg6[%c0_10, %c0_11] : memref<2x64xf32, #tpu.memory_space<vmem>>, vector<2x64xf32>
      %cst_12 = arith.constant dense<0.000000e+00> : vector<2x768xf32>
      %18 = tpu.matmul %17, %16, %cst_12 {dimension_numbers = #tpu.dot_dimension_numbers<[1], [0], [0], [1], [0, 0, 1, 1], [], []>} : vector<2x64xf32>, vector<64x768xf32>, vector<2x768xf32> -> vector<2x768xf32>
      %c0_13 = arith.constant 0 : index
      %c0_14 = arith.constant 0 : index
      %19 = vector.load %arg7[%c0_13, %c0_14] : memref<2x1xf32, #tpu.memory_space<vmem>>, vector<2x1xf32>
      %20 = vector.broadcast %19 : vector<2x1xf32> to vector<2x768xf32>
      %21 = arith.addf %18, %20 : vector<2x768xf32>
      %22 = vector.extract_strided_slice %21 {offsets = [0, 0], sizes = [1, 768], strides = [1, 1]} : vector<2x768xf32> to vector<1x768xf32>
      %23 = vector.extract_strided_slice %21 {offsets = [1, 0], sizes = [1, 768], strides = [1, 1]} : vector<2x768xf32> to vector<1x768xf32>
      %24 = tpu.reciprocal %23 {approx = true} : vector<1x768xf32> -> vector<1x768xf32>
      %25 = arith.mulf %23, %24 : vector<1x768xf32>
      %cst_15 = arith.constant 2.000000e+00 : f32
      %26 = vector.broadcast %cst_15 : f32 to vector<1x768xf32>
      %27 = arith.subf %26, %25 : vector<1x768xf32>
      %28 = arith.mulf %24, %27 : vector<1x768xf32>
      %29 = arith.mulf %22, %28 : vector<1x768xf32>
      %30 = tpu.iota {dimensions = array<i32: 1>} : vector<1x768xi32>
      %c768_i32 = arith.constant 768 : i32
      %31 = arith.muli %arg1, %c768_i32 : i32
      %32 = vector.broadcast %31 : i32 to vector<1x768xi32>
      %33 = arith.addi %30, %32 : vector<1x768xi32>
      %c700_i32 = arith.constant 700 : i32
      %34 = vector.broadcast %c700_i32 : i32 to vector<1x768xi32>
      %35 = arith.cmpi slt, %33, %34 : vector<1x768xi32>
      %cst_16 = arith.constant 0.000000e+00 : f32
      %36 = vector.broadcast %cst_16 : f32 to vector<1x768xf32>
      %37 = arith.select %35, %29, %36 : vector<1x768xi1>, vector<1x768xf32>
      %cst_17 = arith.constant 0.000000e+00 : f32
      %38 = vector.broadcast %cst_17 : f32 to vector<1x768xf32>
      %39 = arith.select %35, %28, %38 : vector<1x768xi1>, vector<1x768xf32>
      %40 = tpu.concatenate %37, %39 in 0 : vector<1x768xf32>, vector<1x768xf32> -> vector<2x768xf32>
      %41 = arith.index_cast %arg1 : i32 to index
      %c0_18 = arith.constant 0 : index
      %c0_19 = arith.constant 0 : index
      %42 = vector.load %arg9[%41, %c0_18, %c0_19] : memref<1x2x768xf32, #tpu.memory_space<vmem>>, vector<1x2x768xf32>
      %43 = vector.shape_cast %42 : vector<1x2x768xf32> to vector<2x768xf32>
      %44 = vector.shape_cast %40 : vector<2x768xf32> to vector<1x2x768xf32>
      tpu.vector_store %arg9[%41, %c0_18, %c0_19], %44 {strides = array<i32>} : memref<1x2x768xf32, #tpu.memory_space<vmem>>, vector<1x2x768xf32>,
      %c0_20 = arith.constant 0 : index
      %c0_21 = arith.constant 0 : index
      %45 = vector.load %arg10[%c0_20, %c0_21] : memref<2x1xf32, #tpu.memory_space<vmem>>, vector<2x1xf32>
      %cst_22 = arith.constant dense<0.000000e+00> : vector<2xf32>
      %46 = vector.multi_reduction <add>, %40, %cst_22 [1] : vector<2x768xf32> to vector<2xf32>
      %47 = vector.shape_cast %46 : vector<2xf32> to vector<2x1xf32>
      %48 = arith.addf %45, %47 : vector<2x1xf32>
      %c0_23 = arith.constant 0 : index
      %c0_24 = arith.constant 0 : index
      %49 = vector.load %arg10[%c0_23, %c0_24] : memref<2x1xf32, #tpu.memory_space<vmem>>, vector<2x1xf32>
      tpu.vector_store %arg10[%c0_23, %c0_24], %48 {strides = array<i32>} : memref<2x1xf32, #tpu.memory_space<vmem>>, vector<2x1xf32>,
      %cst_25 = arith.constant 0.000000e+00 : f32
      %50 = vector.broadcast %cst_25 : f32 to vector<1x768xf32>
      %c0_26 = arith.constant 0 : index
      %c0_27 = arith.constant 0 : index
      %51 = vector.load %arg8[%c0_26, %c0_27] : memref<1x768xf32, #tpu.memory_space<vmem>>, vector<1x768xf32>
      tpu.vector_store %arg8[%c0_26, %c0_27], %50 {strides = array<i32>} : memref<1x768xf32, #tpu.memory_space<vmem>>, vector<1x768xf32>,
    } else {
    }
    %c1_i32 = arith.constant 1 : i32
    %3 = arith.cmpi eq, %arg0, %c1_i32 : i32
    %4 = arith.extui %3 : i1 to i32
    %c0_i32_1 = arith.constant 0 : i32
    %5 = arith.cmpi ne, %4, %c0_i32_1 : i32
    scf.if %5 {
      %6 = arith.index_cast %arg1 : i32 to index
      %c0 = arith.constant 0 : index
      %c0_2 = arith.constant 0 : index
      %7 = vector.load %arg9[%6, %c0, %c0_2] : memref<1x2x768xf32, #tpu.memory_space<vmem>>, vector<1x2x768xf32>
      %8 = vector.shape_cast %7 : vector<1x2x768xf32> to vector<2x768xf32>
      %c0_3 = arith.constant 0 : index
      %9 = memref.load %arg2[%c0_3] : memref<1xf32, #tpu.memory_space<smem>>
      %c0_4 = arith.constant 0 : index
      %c0_5 = arith.constant 0 : index
      %10 = vector.load %arg10[%c0_4, %c0_5] : memref<2x1xf32, #tpu.memory_space<vmem>>, vector<1x1xf32>
      %11 = vector.broadcast %9 : f32 to vector<1x1xf32>
      %12 = arith.addf %11, %10 : vector<1x1xf32>
      %c1 = arith.constant 1 : index
      %c0_6 = arith.constant 0 : index
      %13 = vector.load %arg10[%c1, %c0_6] : memref<2x1xf32, #tpu.memory_space<vmem>>, vector<1x1xf32>
      %14 = arith.divf %12, %13 : vector<1x1xf32>
      %15 = vector.extract_strided_slice %8 {offsets = [1, 0], sizes = [1, 768], strides = [1, 1]} : vector<2x768xf32> to vector<1x768xf32>
      %16 = vector.broadcast %14 : vector<1x1xf32> to vector<1x768xf32>
      %17 = arith.mulf %15, %16 : vector<1x768xf32>
      %18 = vector.extract_strided_slice %8 {offsets = [0, 0], sizes = [1, 768], strides = [1, 1]} : vector<2x768xf32> to vector<1x768xf32>
      %19 = arith.subf %17, %18 : vector<1x768xf32>
      %c0_7 = arith.constant 0 : index
      %c0_8 = arith.constant 0 : index
      %20 = vector.load %arg8[%c0_7, %c0_8] : memref<1x768xf32, #tpu.memory_space<vmem>>, vector<1x768xf32>
      tpu.vector_store %arg8[%c0_7, %c0_8], %19 {strides = array<i32>} : memref<1x768xf32, #tpu.memory_space<vmem>>, vector<1x768xf32>,
    } else {
    }
    return
  }
  func.func @transform_0(%arg0: i32, %arg1: i32) -> i32 {
    %c0_i32 = arith.constant 0 : i32
    %c0_i32_0 = arith.constant 0 : i32
    return %c0_i32 : i32
  }
  func.func @transform_1(%arg0: i32, %arg1: i32) -> (i32, i32) {
    %c0_i32 = arith.constant 0 : i32
    %c0_i32_0 = arith.constant 0 : i32
    return %c0_i32, %arg1 : i32, i32
  }
  func.func @transform_2(%arg0: i32, %arg1: i32) -> (i32, i32) {
    %c0_i32 = arith.constant 0 : i32
    %c0_i32_0 = arith.constant 0 : i32
    %c0_i32_1 = arith.constant 0 : i32
    return %c0_i32, %c0_i32_0 : i32, i32
  }
  func.func @transform_3(%arg0: i32, %arg1: i32) -> (i32, i32) {
    %c0_i32 = arith.constant 0 : i32
    %c0_i32_0 = arith.constant 0 : i32
    %c0_i32_1 = arith.constant 0 : i32
    return %c0_i32, %c0_i32_0 : i32, i32
  }
  func.func @transform_4(%arg0: i32, %arg1: i32) -> (i32, i32) {
    %c0_i32 = arith.constant 0 : i32
    %c0_i32_0 = arith.constant 0 : i32
    %c0_i32_1 = arith.constant 0 : i32
    return %c0_i32, %c0_i32_0 : i32, i32
  }
  func.func @transform_5(%arg0: i32, %arg1: i32) -> (i32, i32) {
    %c0_i32 = arith.constant 0 : i32
    %c0_i32_0 = arith.constant 0 : i32
    %c0_i32_1 = arith.constant 0 : i32
    return %c0_i32, %c0_i32_0 : i32, i32
  }
  func.func @transform_6(%arg0: i32, %arg1: i32) -> (i32, i32) {
    %c0_i32 = arith.constant 0 : i32
    %c0_i32_0 = arith.constant 0 : i32
    return %c0_i32, %arg1 : i32, i32
  }
}

</mosaic_0001>

<bundles_post_ra>
// kernel: readout_module_forward.1
= control target key start
LH: loop header
LB: loop body
LE: loop exit
PB: predicated region body
PF: predicated region fallthrough
CT: control target
= control target key end

     0   :  { %s1657_s0 = inlined_call_operand.<no memory space> [shape: f32[1], index: 0, kind: input, shape index: {}]   ;;  %s1658_s1 = inlined_call_operand.hbm [shape: f32[32,700], index: 1, kind: input, shape index: {}]   ;;  %s1659_s2 = inlined_call_operand.vmem [shape: f32[64,32], index: 2, kind: input, shape index: {}]   ;;  %s1660_s3 = inlined_call_operand.vmem [shape: f32[64,1], index: 3, kind: input, shape index: {}]   ;;  %s1661_s4 = inlined_call_operand.vmem [shape: f32[2,64], index: 4, kind: input, shape index: {}]   ;;  %s1662_s5 = inlined_call_operand.vmem [shape: f32[2,1], index: 5, kind: input, shape index: {}]   ;;  %s1663_s6 = inlined_call_operand.hbm [shape: f32[1,700], index: 6, kind: output, shape index: {}]  }
   0x1   :  { %11 = sst [smem:[#allocation4]] %s1657_s0 }
   0x2   :  { %12 = vsyncpa [#allocation6], 0 }
   0x3   :  { %13 = vsyncpa [#allocation7], 0  ;;  %s1340_s23 = smov 0   ;;  %s1342_s24 = smov 0  }
   0x4   :  { %s1344_s25 = smov 0  }
   0x5 LB: > { %s1065_s0 = sadd.s32 4294967295, %s1292_s25   ;;  %s31_s26 = sadd.s32 1, %s1288_s24  ;;  %s1292_s25 = sphi %s1344_s25, %s19_s25   ;;  %s1288_s24 = sphi %s1342_s24, %s1665_s24   ;;  %s1284_s23 = sphi %s1340_s23, %s1664_s23  }
   0x6   : > { %p33_p0 = scmp.ge.s32.totalorder %s31_s26, 2  ;;  %p1066_p1 = scmp.ge.s32.totalorder %s1292_s25, 1 }
   0x7   : > { %p193_p2 = scmp.lt.s32.totalorder %s1292_s25, 3  ;;  %p1150_p4 = scmp.eq.s32.totalorder %s1065_s0, 0 }
   0x8   : > { %s1667_s26 = smov (%p33_p0, %s31_s26), 0  ;;  %s210_s29 = sshll.u32 %s1658_s1, 4  ;;  %s211_s29 = int_to_ptr.hbm [resolvable:$true] %s210_s29 }
   0x9   : > { %p194_p3 = pnand %p1066_p1, %p193_p2  ;;  %s1294_s30 = smov [#allocation5]  }
   0xa   : > { %s212_s7 = sshll.u32 %s1294_s30, 4  ;;  %s1295_s8 = smov 768   ;;  %s213_s7 = int_to_ptr.vmem [resolvable:$true] %s212_s7 }
   0xb   : > { %p1146_p5 = pneg %p194_p3  ;;  %s1296_s9 = smov 48  }
   0xc   : > { %240 = sbr.rel (%p194_p3) target bundleno = 734 (0x2de), region = 44 }
   0xd   : > { %p1147_p6 = pnand %p1150_p4, %p1146_p5 }
   0xf   : > { %1149 = dma.hbm_to_vmem [thread:$0]  (!%p1147_p6), %s211_s29, 3072, %s213_s7, [#allocation6], %s1295_s8, %s1295_s8, %s1296_s9  }
  0x11   : > { %1275 = dma.done.wait (%p1150_p4), [#allocation6], 3072  }
  0x12   : > { %1277 = vsyncadd (%p1150_p4), [#allocation6], 4294964224  ;;  %p1070_p7 = scmp.ne.s32.totalorder %s1284_s23, 0 }
  0x14   : > { %266 = sbr.rel (%p1070_p7) target bundleno = 568 (0x238), region = 52 }
  0x19   : > { %v299_v0 = vld [vmem:[#allocation5 + $0x90] sm:$0xff]  ;;  %v300_v1 = vld [vmem:[#allocation5 + $0x98] sm:$0xff]  ;;  %v293_v3 = vld [vmem:[#allocation5 + $0x60] sm:$0xff]  ;;  %v1297_v5 = vmov 0   ;;  %vm353_vm0 = vcmask 261120   ;;  %vm679_vm1 = vcmask 523264  }
  0x1a   : > { %390 = vmatpush.msra.mxu0 %v299_v0  ;;  %1130 = vmatpush.msra.mxu2 %v299_v0  ;;  %v310_v2 = vld [vmem:[%s1660_s3 + $0x28] sm:$0xff]  ;;  %v294_v4 = vld [vmem:[#allocation5 + $0x68] sm:$0xff]  ;;  %v281_v8 = vld [vmem:[#allocation5] sm:$0xff]  ;;  %vm884_vm2 = vcmask 1040384   ;;  %vm903_vm3 = vcmask 1045508   ;;  %vm905_vm4 = vcmask 1043456  }
  0x1b   : > { %431 = vmatpush.msra.mxu1 %v300_v1  ;;  %1134 = vmatpush.msra.mxu3 %v300_v1  ;;  %v287_v6 = vld [vmem:[#allocation5 + $0x30] sm:$0xff]  ;;  %v288_v7 = vld [vmem:[#allocation5 + $0x38] sm:$0xff]  ;;  %v282_v9 = vld [vmem:[#allocation5 + $0x8] sm:$0xff]  ;;  %vm901_vm5 = vcmask 1041408   ;;  %vm271_vm8 = vcmask 1024  }
  0x1c   : > { %1187 = vset.pattern.permute.xlu1 %v1297_v5  ;;  %391 = vmatpush.msra.mxu0 %v293_v3  ;;  %v1374_v10 = vld [vmem:[%s1659_s2] sm:$0xff]  ;;  %v1379_v11 = vld [vmem:[%s1659_s2 + $0x38] sm:$0xff]  ;;  %v304_v15 = vld [vmem:[#allocation5 + $0xb8] sm:$0xff] }
  0x1d   : > { %340 = vperm.xlu1 %1187, %v310_v2   ;;  %1131 = vmatpush.msra.mxu2 %v293_v3  ;;  %v303_v12 = vld [vmem:[#allocation5 + $0xb0] sm:$0xff]  ;;  %v301_v13 = vld [vmem:[#allocation5 + $0xa0] sm:$0xff]  ;;  %v302_v14 = vld [vmem:[#allocation5 + $0xa8] sm:$0xff] }
  0x1e   : > { %432 = vmatpush.msra.mxu1 %v294_v4  ;;  %1135 = vmatpush.msra.mxu3 %v294_v4  ;;  %v309_v16 = vld [vmem:[%s1660_s3 + $0x20] sm:$0xff]  ;;  %v312_v17 = vld [vmem:[%s1660_s3 + $0x38] sm:$0xff]  ;;  %v296_v19 = vld [vmem:[#allocation5 + $0x78] sm:$0xff] }
  0x1f   : > { %392 = vmatpush.msra.mxu0 %v287_v6  ;;  %1132 = vmatpush.msra.mxu2 %v287_v6  ;;  %v295_v18 = vld [vmem:[#allocation5 + $0x70] sm:$0xff]  ;;  %v297_v20 = vld [vmem:[#allocation5 + $0x80] sm:$0xff]  ;;  %v298_v22 = vld [vmem:[#allocation5 + $0x88] sm:$0xff] }
  0x20   : > { %433 = vmatpush.msra.mxu1 %v288_v7  ;;  %1136 = vmatpush.msra.mxu3 %v288_v7  ;;  %v289_v21 = vld [vmem:[#allocation5 + $0x40] sm:$0xff]  ;;  %v290_v23 = vld [vmem:[#allocation5 + $0x48] sm:$0xff]  ;;  %v1399_v24 = vld [vmem:[%s1659_s2 + $0x8] sm:$0xff] }
  0x21   : > { %393 = vmatpush.msra.mxu0 %v281_v8  ;;  %1133 = vmatpush.msra.mxu2 %v281_v8  ;;  %v283_v25 = vld [vmem:[#allocation5 + $0x10] sm:$0xff]  ;;  %v284_v26 = vld [vmem:[#allocation5 + $0x18] sm:$0xff]  ;;  %v285_v31 = vld [vmem:[#allocation5 + $0x20] sm:$0xff] }
  0x22   : > { %434 = vmatpush.msra.mxu1 %v282_v9  ;;  %1137 = vmatpush.msra.mxu3 %v282_v9  ;;  %v291_v27 = vld [vmem:[#allocation5 + $0x50] sm:$0xff]  ;;  %v292_v29 = vld [vmem:[#allocation5 + $0x58] sm:$0xff]  ;;  %v308_v32 = vld [vmem:[%s1660_s3 + $0x18] sm:$0xff] }
  0x23   : > { %1071 = vmatmul.msk.f32.vlgmr.msra.gmra.mxu0 %vm353_vm0, %v1374_v10  ;;  %1078 = vmatmul.msk.f32.vlgmr.msra.gmra.mxu2 %vm353_vm0, %v1379_v11  ;;  %v305_v28 = vld [vmem:[%s1660_s3] sm:$0xff]  ;;  %v311_v30 = vld [vmem:[%s1660_s3 + $0x30] sm:$0xff]  ;;  %v306_v35 = vld [vmem:[%s1660_s3 + $0x8] sm:$0xff] }
  0x24   : > { %1079 = vmatmul.msk.f32.vlgmr.msra.gmra.mxu1 %vm353_vm0, %v1374_v10  ;;  %1086 = vmatmul.msk.f32.vlgmr.msra.gmra.mxu3 %vm353_vm0, %v1379_v11  ;;  %v286_v33 = vld [vmem:[#allocation5 + $0x28] sm:$0xff]  ;;  %v275_v34 = vld [vmem:[%s1659_s2 + $0x10] sm:$0xff]  ;;  %v278_v39 = vld [vmem:[%s1659_s2 + $0x28] sm:$0xff] }
  0x25   : > { %554 = vmatpush.msrb.mxu0 %v303_v12  ;;  %472 = vmatpush.msrb.mxu2 %v301_v13  ;;  %v307_v36 = vld [vmem:[%s1660_s3 + $0x10] sm:$0xff]  ;;  %v276_v37 = vld [vmem:[%s1659_s2 + $0x18] sm:$0xff]  ;;  %v277_v38 = vld [vmem:[%s1659_s2 + $0x20] sm:$0xff] }
  0x26   : > { %513 = vmatpush.msrb.mxu3 %v302_v14  ;;  %595 = vmatpush.msrb.mxu1 %v304_v15  ;;  %v279_v40 = vld [vmem:[%s1659_s2 + $0x30] sm:$0xff]  ;;  %v673_v41 = vld [vmem:[%s1662_s5] sm:$0x3] }
  0x27   : > { %1186 = vset.pattern.permute.xlu0 %v1297_v5  ;;  %335 = vperm.xlu1 %1187, %v309_v16  }
  0x28   : > { %350 = vperm.xlu0 %1186, %v312_v17   ;;  %473 = vmatpush.msrb.mxu2 %v295_v18 }
  0x29   : > { %514 = vmatpush.msrb.mxu3 %v296_v19  ;;  %555 = vmatpush.msrb.mxu0 %v297_v20 }
  0x2a   : > { %474 = vmatpush.msrb.mxu2 %v289_v21  ;;  %596 = vmatpush.msrb.mxu1 %v298_v22 }
  0x2b   : > { %515 = vmatpush.msrb.mxu3 %v290_v23  ;;  %1072 = vmatmul.msk.f32.gmra.mxu0 %vm353_vm0, %v1399_v24 }
  0x2c   : > { %475 = vmatpush.msrb.mxu2 %v283_v25  ;;  %1080 = vmatmul.msk.f32.gmra.mxu1 %vm353_vm0, %v1399_v24 }
  0x2d   : > { %516 = vmatpush.msrb.mxu3 %v284_v26  ;;  %1087 = vmatmul.msk.f32.vlgmr.msrb.gmra.mxu2 %vm353_vm0, %v1374_v10 }
  0x2e   : > { %1095 = vmatmul.msk.f32.vlgmr.msrb.gmra.mxu3 %vm353_vm0, %v1374_v10  ;;  %556 = vmatpush.msrb.mxu0 %v291_v27 }
  0x2f   : > { %315 = vperm.xlu1 %1187, %v305_v28   ;;  %597 = vmatpush.msrb.mxu1 %v292_v29 }
  0x30   : > { %345 = vperm.xlu0 %1186, %v311_v30   ;;  %1188 = vset.pattern.permute.xlu2 %v1297_v5 }
  0x31   : > { %557 = vmatpush.msrb.mxu0 %v285_v31  ;;  %330 = vperm.xlu2 %1188, %v308_v32  }
  0x32   : > { %598 = vmatpush.msrb.mxu1 %v286_v33 }
  0x33   : > { %1073 = vmatmul.msk.f32.gmra.mxu0 %vm353_vm0, %v275_v34 }
  0x34   : > { %1081 = vmatmul.msk.f32.gmra.mxu1 %vm353_vm0, %v275_v34 }
  0x35   : > { %1088 = vmatmul.msk.f32.gmra.mxu2 %vm353_vm0, %v1399_v24 }
  0x36   : > { %1096 = vmatmul.msk.f32.gmra.mxu3 %vm353_vm0, %v1399_v24 }
  0x38   : > { %320 = vperm.xlu0 %1186, %v306_v35  }
  0x39   : > { %325 = vperm.xlu2 %1188, %v307_v36  }
  0x3b   : > { %1074 = vmatmul.msk.f32.gmra.mxu0 %vm353_vm0, %v276_v37 }
  0x3c   : > { %1082 = vmatmul.msk.f32.gmra.mxu1 %vm353_vm0, %v276_v37 }
  0x3d   : > { %1089 = vmatmul.msk.f32.gmra.mxu2 %vm353_vm0, %v275_v34 }
  0x3e   : > { %1097 = vmatmul.msk.f32.gmra.mxu3 %vm353_vm0, %v275_v34 }
  0x41   : > { %676 = vperm.xlu2 %1188, %v673_v41  }
  0x43   : > { %1075 = vmatmul.msk.f32.gmra.mxu0 %vm353_vm0, %v277_v38 }
  0x44   : > { %1083 = vmatmul.msk.f32.gmra.mxu1 %vm353_vm0, %v277_v38 }
  0x45   : > { %1090 = vmatmul.msk.f32.gmra.mxu2 %vm353_vm0, %v276_v37 }
  0x46   : > { %1098 = vmatmul.msk.f32.gmra.mxu3 %vm353_vm0, %v276_v37 }
  0x4b   : > { %1076 = vmatmul.msk.f32.gmra.mxu0 %vm353_vm0, %v278_v39 }
  0x4c   : > { %1084 = vmatmul.msk.f32.gmra.mxu1 %vm353_vm0, %v278_v39 }
  0x4d   : > { %1091 = vmatmul.msk.f32.gmra.mxu2 %vm353_vm0, %v277_v38 }
  0x4e   : > { %1099 = vmatmul.msk.f32.gmra.mxu3 %vm353_vm0, %v277_v38 }
  0x53   : > { %1077 = vmatmul.msk.f32.gmra.mxu0 %vm353_vm0, %v279_v40 }
  0x54   : > { %1085 = vmatmul.msk.f32.gmra.mxu1 %vm353_vm0, %v279_v40 }
  0x55   : > { %1092 = vmatmul.msk.f32.gmra.mxu2 %vm353_vm0, %v278_v39 }
  0x56   : > { %1100 = vmatmul.msk.f32.gmra.mxu3 %vm353_vm0, %v278_v39 }
  0x5b   : > { %1103 = vmatmul.msk.f32.vlgmr.msrb.gmra.mxu0 %vm353_vm0, %v1374_v10 }
  0x5c   : > { %1111 = vmatmul.msk.f32.vlgmr.msrb.gmra.mxu1 %vm353_vm0, %v1374_v10 }
  0x5d   : > { %1093 = vmatmul.msk.f32.gmra.mxu2 %vm353_vm0, %v279_v40 }
  0x5e   : > { %1101 = vmatmul.msk.f32.gmra.mxu3 %vm353_vm0, %v279_v40 }
  0x63   : > { %1104 = vmatmul.msk.f32.gmra.mxu0 %vm353_vm0, %v1399_v24 }
  0x64   : > { %1112 = vmatmul.msk.f32.gmra.mxu1 %vm353_vm0, %v1399_v24 }
  0x65   : > { %1094 = vmatmul.msk.f32.gmra.mxu2 %vm353_vm0, %v1379_v11 }
  0x66   : > { %1102 = vmatmul.msk.f32.gmra.mxu3 %vm353_vm0, %v1379_v11 }
  0x6b   : > { %1105 = vmatmul.msk.f32.gmra.mxu0 %vm353_vm0, %v275_v34 }
  0x6c   : > { %1113 = vmatmul.msk.f32.gmra.mxu1 %vm353_vm0, %v275_v34 }
  0x73   : > { %1106 = vmatmul.msk.f32.gmra.mxu0 %vm353_vm0, %v276_v37 }
  0x74   : > { %1114 = vmatmul.msk.f32.gmra.mxu1 %vm353_vm0, %v276_v37 }
  0x7b   : > { %1107 = vmatmul.msk.f32.gmra.mxu0 %vm353_vm0, %v277_v38 }
  0x7c   : > { %1115 = vmatmul.msk.f32.gmra.mxu1 %vm353_vm0, %v277_v38 }
  0x83   : > { %1108 = vmatmul.msk.f32.gmra.mxu0 %vm353_vm0, %v278_v39 }
  0x84   : > { %1116 = vmatmul.msk.f32.gmra.mxu1 %vm353_vm0, %v278_v39 }
  0x8b   : > { %1109 = vmatmul.msk.f32.gmra.mxu0 %vm353_vm0, %v279_v40  ;;  %v1519_v6 = vpop.permute.xlu2 %330 }
  0x8c   : > { %1117 = vmatmul.msk.f32.gmra.mxu1 %vm353_vm0, %v279_v40 }
  0x8f   : > { %v1513_v1 = vpop.permute.xlu1 %340 }
  0x93   : > { %1110 = vmatmul.msk.f32.gmra.mxu0 %vm353_vm0, %v1379_v11  ;;  %v1534_v19 = vpop.permute.xlu2 %325 }
  0x94   : > { %1118 = vmatmul.msk.f32.gmra.mxu1 %vm353_vm0, %v1379_v11 }
  0x99   : > { %v1523_v8 = vpop.permute.xlu1 %335 }
  0x9a   : > { %v1497_v44 = vpop.permute.xlu0 %350 }
  0xa0   : > { %v1493_v42 = vpop.f32.mrf.mxu0 }
  0xa1   : > { %v1495_v43 = vpop.f32.mrf.mxu1  ;;  %v1541_v27 = vpop.permute.xlu1 %315 }
  0xa2   : > { %v1521_v7 = vpop.permute.xlu0 %345 }
  0xa6   : > { %v416_v45 = vpop.f32.mrf.mxu2 }
  0xa7   : > { %v417_v46 = vadd.f32 %v416_v45, %v1497_v44  ;;  %v457_v47 = vpop.f32.mrf.mxu3  ;;  %v396_v45 = vadd.f32 %v1493_v42, %v1541_v27 }
  0xa8   : > { %v458_v48 = vadd.f32 %v457_v47, %v1497_v44  ;;  %v398_v49 = vpop.f32.mrf.mxu0  ;;  %v437_v47 = vadd.f32 %v1495_v43, %v1541_v27 }
  0xa9   : > { %v666_v50 = vmax.f32 %v417_v46, 0.0  ;;  %v439_v51 = vpop.f32.mrf.mxu1 }
  0xaa   : > { %v667_v52 = vmax.f32 %v458_v48, 0.0  ;;  %v1538_v24 = vpop.permute.xlu0 %320  ;;  %v625_v42 = vmax.f32 %v437_v47, 0.0 }
  0xab   : > { %691 = vmatpush.msra.mxu2 %v666_v50  ;;  %v399_v34 = vadd.f32 %v398_v49, %v1538_v24  ;;  %v440_v39 = vadd.f32 %v439_v51, %v1538_v24  ;;  %v624_v51 = vmax.f32 %v396_v45, 0.0 }
  0xac   : > { %711 = vmatpush.msra.mxu3 %v667_v52  ;;  %v1560_v52 = vld [vmem:[%s1661_s4] sm:$0x3] }
  0xad   : > { %v630_v49 = vmax.f32 %v399_v34, 0.0  ;;  %v631_v50 = vmax.f32 %v440_v39, 0.0 }
  0xb0   : > { %v1501_v53 = vpop.f32.mrf.mxu2  ;;  %v401_v54 = vpop.f32.mrf.mxu0 }
  0xb1   : > { %v1503_v55 = vpop.f32.mrf.mxu3  ;;  %v442_v56 = vpop.f32.mrf.mxu1  ;;  %v402_v28 = vadd.f32 %v401_v54, %v1534_v19 }
  0xb2   : > { %v443_v30 = vadd.f32 %v442_v56, %v1534_v19 }
  0xb3   : > { %v636_v46 = vmax.f32 %v402_v28, 0.0 }
  0xb4   : > { %v637_v48 = vmax.f32 %v443_v30, 0.0 }
  0xb8   : > { %v1505_v57 = vpop.f32.mrf.mxu2  ;;  %v404_v58 = vpop.f32.mrf.mxu0 }
  0xb9   : > { %v1507_v59 = vpop.f32.mrf.mxu3  ;;  %v445_v60 = vpop.f32.mrf.mxu1  ;;  %v405_v22 = vadd.f32 %v404_v58, %v1519_v6 }
  0xba   : > { %v446_v25 = vadd.f32 %v445_v60, %v1519_v6 }
  0xbb   : > { %v642_v35 = vmax.f32 %v405_v22, 0.0 }
  0xbc   : > { %v643_v40 = vmax.f32 %v446_v25, 0.0 }
  0xc0   : > { %v1509_v61 = vpop.f32.mrf.mxu2  ;;  %v407_v62 = vpop.f32.mrf.mxu0 }
  0xc1   : > { %v1511_v63 = vpop.f32.mrf.mxu3  ;;  %v448_v0 = vpop.f32.mrf.mxu1  ;;  %v408_v17 = vadd.f32 %v407_v62, %v1523_v8  ;;  %v484_v30 = vadd.f32 %v1509_v61, %v1534_v19  ;;  %v478_v61 = vadd.f32 %v1501_v53, %v1541_v27 }
  0xc2   : > { %v449_v20 = vadd.f32 %v448_v0, %v1523_v8 }
  0xc3   : > { %v648_v29 = vmax.f32 %v408_v17, 0.0 }
  0xc4   : > { %v649_v31 = vmax.f32 %v449_v20, 0.0 }
  0xc8   : > { %v1515_v2 = vpop.f32.mrf.mxu2  ;;  %v410_v3 = vpop.f32.mrf.mxu0 }
  0xc9   : > { %v1517_v4 = vpop.f32.mrf.mxu3  ;;  %v451_v5 = vpop.f32.mrf.mxu1  ;;  %v411_v11 = vadd.f32 %v410_v3, %v1513_v1 }
  0xca   : > { %v452_v15 = vadd.f32 %v451_v5, %v1513_v1  ;;  %v528_v28 = vadd.f32 %v1517_v4, %v1519_v6  ;;  %v522_v4 = vadd.f32 %v1507_v59, %v1538_v24 }
  0xcb   : > { %v654_v23 = vmax.f32 %v411_v11, 0.0 }
  0xcc   : > { %v655_v26 = vmax.f32 %v452_v15, 0.0  ;;  %v645_v34 = vmax.f32 %v528_v28, 0.0 }
  0xd0   : > { %v1525_v9 = vpop.f32.mrf.mxu2  ;;  %v413_v10 = vpop.f32.mrf.mxu0 }
  0xd1   : > { %v1528_v12 = vpop.f32.mrf.mxu3  ;;  %v414_v13 = vadd.f32 %v413_v10, %v1521_v7  ;;  %v454_v14 = vpop.f32.mrf.mxu1 }
  0xd2   : > { %v455_v16 = vadd.f32 %v454_v14, %v1521_v7 }
  0xd3   : > { %v660_v18 = vmax.f32 %v414_v13, 0.0 }
  0xd4   : > { %v661_v21 = vmax.f32 %v455_v16, 0.0 }
  0xd5   : > { %692 = vmatpush.msra.mxu2 %v660_v18 }
  0xd6   : > { %712 = vmatpush.msra.mxu3 %v661_v21  ;;  %v490_v21 = vadd.f32 %v1525_v9, %v1523_v8 }
  0xd7   : > { %693 = vmatpush.msra.mxu2 %v654_v23  ;;  %v531_v23 = vadd.f32 %v1528_v12, %v1523_v8  ;;  %v525_v12 = vadd.f32 %v1511_v63, %v1534_v19  ;;  %v519_v63 = vadd.f32 %v1503_v55, %v1541_v27 }
  0xd8   : > { %v492_v32 = vpop.f32.mrf.mxu2  ;;  %713 = vmatpush.msra.mxu3 %v655_v26  ;;  %v559_v33 = vpop.f32.mrf.mxu0  ;;  %v487_v26 = vadd.f32 %v1515_v2, %v1519_v6  ;;  %v650_v9 = vmax.f32 %v490_v21, 0.0  ;;  %v481_v2 = vadd.f32 %v1505_v57, %v1538_v24  ;;  %v633_v57 = vmax.f32 %v522_v4, 0.0 }
  0xd9   : > { %v533_v36 = vpop.f32.mrf.mxu3  ;;  %v1547_v37 = vadd.f32 %v559_v33, %v1541_v27  ;;  %v600_v38 = vpop.f32.mrf.mxu1  ;;  %694 = vmatpush.msra.mxu2 %v648_v29  ;;  %v493_v5 = vadd.f32 %v492_v32, %v1513_v1  ;;  %v651_v32 = vmax.f32 %v531_v23, 0.0  ;;  %v627_v45 = vmax.f32 %v519_v63, 0.0 }
  0xda   : > { %v1551_v41 = vadd.f32 %v600_v38, %v1541_v27  ;;  %714 = vmatpush.msra.mxu3 %v649_v31  ;;  %v534_v14 = vadd.f32 %v533_v36, %v1513_v1  ;;  %v644_v33 = vmax.f32 %v487_v26, 0.0  ;;  %v639_v36 = vmax.f32 %v525_v12, 0.0 }
  0xdb   : > { %695 = vmatpush.msra.mxu2 %v642_v35  ;;  %v656_v22 = vmax.f32 %v493_v5, 0.0  ;;  %v638_v35 = vmax.f32 %v484_v30, 0.0  ;;  %v632_v38 = vmax.f32 %v481_v2, 0.0 }
  0xdc   : > { %715 = vmatpush.msra.mxu3 %v643_v40  ;;  %v657_v25 = vmax.f32 %v534_v14, 0.0  ;;  %v626_v40 = vmax.f32 %v478_v61, 0.0 }
  0xdd   : > { %696 = vmatpush.msra.mxu2 %v636_v46 }
  0xde   : > { %716 = vmatpush.msra.mxu3 %v637_v48 }
  0xdf   : > { %697 = vmatpush.msra.mxu2 %v630_v49 }
  0xe0   : > { %v495_v54 = vpop.f32.mrf.mxu2  ;;  %717 = vmatpush.msra.mxu3 %v631_v50  ;;  %v1562_v56 = vpop.f32.mrf.mxu0 }
  0xe1   : > { %v536_v43 = vpop.f32.mrf.mxu3  ;;  %v1564_v58 = vpop.f32.mrf.mxu1  ;;  %698 = vmatpush.msra.mxu2 %v624_v51  ;;  %v496_v60 = vadd.f32 %v495_v54, %v1521_v7 }
  0xe2   : > { %718 = vmatpush.msra.mxu3 %v625_v42  ;;  %1119 = vmatmul.msk.f32.vlgmr.msra.gmra.mxu2 %vm679_vm1, %v1560_v52  ;;  %v537_v62 = vadd.f32 %v536_v43, %v1521_v7 }
  0xe3   : > { %1120 = vmatmul.msk.f32.vlgmr.msra.gmra.mxu3 %vm679_vm1, %v1560_v52  ;;  %v662_v16 = vmax.f32 %v496_v60, 0.0 }
  0xe4   : > { %v663_v18 = vmax.f32 %v537_v62, 0.0 }
  0xe8   : > { %v498_v0 = vpop.f32.mrf.mxu2  ;;  %v1572_v3 = vpop.f32.mrf.mxu0 }
  0xe9   : > { %v499_v10 = vadd.f32 %v498_v0, %v1497_v44  ;;  %v539_v11 = vpop.f32.mrf.mxu3  ;;  %v1576_v13 = vpop.f32.mrf.mxu1 }
  0xea   : > { %v540_v15 = vadd.f32 %v539_v11, %v1497_v44 }
  0xeb   : > { %v668_v17 = vmax.f32 %v499_v10, 0.0 }
  0xec   : > { %v669_v20 = vmax.f32 %v540_v15, 0.0 }
  0xed   : > { %731 = vmatpush.msrb.mxu2 %v668_v17  ;;  %v607_v17 = vadd.f32 %v1576_v13, %v1534_v19 }
  0xee   : > { %751 = vmatpush.msrb.mxu3 %v669_v20 }
  0xef   : > { %732 = vmatpush.msrb.mxu2 %v662_v16 }
  0xf0   : > { %752 = vmatpush.msrb.mxu3 %v663_v18  ;;  %v568_v29 = vpop.f32.mrf.mxu0 }
  0xf1   : > { %733 = vmatpush.msrb.mxu2 %v656_v22  ;;  %v609_v31 = vpop.f32.mrf.mxu1  ;;  %v569_v14 = vadd.f32 %v568_v29, %v1519_v6 }
  0xf2   : > { %753 = vmatpush.msrb.mxu3 %v657_v25 }
  0xf3   : > { %734 = vmatpush.msrb.mxu2 %v650_v9  ;;  %v646_v20 = vmax.f32 %v569_v14, 0.0 }
  0xf4   : > { %754 = vmatpush.msrb.mxu3 %v651_v32 }
  0xf5   : > { %735 = vmatpush.msrb.mxu2 %v644_v33 }
  0xf6   : > { %755 = vmatpush.msrb.mxu3 %v645_v34 }
  0xf7   : > { %736 = vmatpush.msrb.mxu2 %v638_v35 }
  0xf8   : > { %756 = vmatpush.msrb.mxu3 %v639_v36  ;;  %v571_v39 = vpop.f32.mrf.mxu0 }
  0xf9   : > { %737 = vmatpush.msrb.mxu2 %v632_v38  ;;  %v612_v59 = vpop.f32.mrf.mxu1  ;;  %v572_v0 = vadd.f32 %v571_v39, %v1523_v8 }
  0xfa   : > { %757 = vmatpush.msrb.mxu3 %v633_v57  ;;  %v613_v10 = vadd.f32 %v612_v59, %v1523_v8  ;;  %v563_v8 = vadd.f32 %v1562_v56, %v1538_v24  ;;  %v629_v56 = vmax.f32 %v1551_v41, 0.0 }
  0xfb   : > { %738 = vmatpush.msrb.mxu2 %v626_v40  ;;  %v652_v16 = vmax.f32 %v572_v0, 0.0 }
  0xfc   : > { %758 = vmatpush.msrb.mxu3 %v627_v45  ;;  %1121 = vmatmul.msk.f32.vlgmr.msrb.gmra.mxu2 %vm679_vm1, %v1560_v52  ;;  %v653_v18 = vmax.f32 %v613_v10, 0.0  ;;  %v634_v23 = vmax.f32 %v563_v8, 0.0 }
  0xfd   : > { %1122 = vmatmul.msk.f32.vlgmr.msrb.gmra.mxu3 %vm679_vm1, %v1560_v52 }
 0x100   : > { %v574_v53 = vpop.f32.mrf.mxu0 }
 0x101   : > { %v615_v55 = vpop.f32.mrf.mxu1  ;;  %v575_v54 = vadd.f32 %v574_v53, %v1513_v1 }
 0x102   : > { %v616_v60 = vadd.f32 %v615_v55, %v1513_v1  ;;  %v566_v1 = vadd.f32 %v1572_v3, %v1534_v19  ;;  %v641_v3 = vmax.f32 %v607_v17, 0.0  ;;  %v628_v19 = vmax.f32 %v1547_v37, 0.0 }
 0x103   : > { %v658_v15 = vmax.f32 %v575_v54, 0.0 }
 0x104   : > { %v640_v22 = vmax.f32 %v566_v1, 0.0 }
 0x108   : > { %v577_v27 = vpop.f32.mrf.mxu0 }
 0x109   : > { %v618_v46 = vpop.f32.mrf.mxu1  ;;  %v578_v48 = vadd.f32 %v577_v27, %v1521_v7 }
 0x10a   : > { %v619_v51 = vadd.f32 %v618_v46, %v1521_v7  ;;  %v659_v7 = vmax.f32 %v616_v60, 0.0 }
 0x10b   : > { %v664_v5 = vmax.f32 %v578_v48, 0.0 }
 0x10c   : > { %v665_v11 = vmax.f32 %v619_v51, 0.0 }
 0x110   : > { %v580_v47 = vpop.f32.mrf.mxu0 }
 0x111   : > { %v581_v49 = vadd.f32 %v580_v47, %v1497_v44  ;;  %v621_v50 = vpop.f32.mrf.mxu1 }
 0x112   : > { %v622_v42 = vadd.f32 %v621_v50, %v1497_v44  ;;  %v610_v44 = vadd.f32 %v609_v31, %v1519_v6  ;;  %v604_v6 = vadd.f32 %v1564_v58, %v1538_v24  ;;  %v677_v58 = vpop.permute.xlu2 %676 }
 0x113   : > { %v670_v43 = vmax.f32 %v581_v49, 0.0 }
 0x114   : > { %v671_v62 = vmax.f32 %v622_v42, 0.0  ;;  %v647_v21 = vmax.f32 %v610_v44, 0.0  ;;  %v635_v25 = vmax.f32 %v604_v6, 0.0 }
 0x115   : > { %771 = vmatpush.msra.mxu2 %v670_v43 }
 0x116   : > { %791 = vmatpush.msra.mxu3 %v671_v62 }
 0x117   : > { %772 = vmatpush.msra.mxu2 %v664_v5 }
 0x118   : > { %792 = vmatpush.msra.mxu3 %v665_v11 }
 0x119   : > { %773 = vmatpush.msra.mxu2 %v658_v15  ;;  %v851_v15 = vlaneseq }
 0x11a   : > { %793 = vmatpush.msra.mxu3 %v659_v7 }
 0x11b   : > { %774 = vmatpush.msra.mxu2 %v652_v16  ;;  %v852_v16 = vand.u32 127, %v851_v15  ;;  %vm934_vm7 = vcmp.lt.s32.totalorder %v851_v15, 768 }
 0x11c   : > { %794 = vmatpush.msra.mxu3 %v653_v18 }
 0x11d   : > { %775 = vmatpush.msra.mxu2 %v646_v20 }
 0x11e   : > { %795 = vmatpush.msra.mxu3 %v647_v21 }
 0x11f   : > { %776 = vmatpush.msra.mxu2 %v640_v22 }
 0x120   : > { %796 = vmatpush.msra.mxu3 %v641_v3  ;;  %v857_v3 = vadd.s32 640, %v852_v16 }
 0x121   : > { %777 = vmatpush.msra.mxu2 %v634_v23 }
 0x122   : > { %797 = vmatpush.msra.mxu3 %v635_v25  ;;  %vm871_vm6 = vcmp.lt.s32.totalorder %v857_v3, 700 }
 0x123   : > { %778 = vmatpush.msra.mxu2 %v628_v19 }
 0x124   : > { %798 = vmatpush.msra.mxu3 %v629_v56  ;;  %1123 = vmatmul.msk.f32.vlgmr.msra.gmra.mxu2 %vm679_vm1, %v1560_v52 }
 0x125   : > { %1124 = vmatmul.msk.f32.vlgmr.msra.gmra.mxu3 %vm679_vm1, %v1560_v52 }
 0x165   : > { %v700_v26 = vpop.f32.mrf.mxu2 }
 0x166   : > { %v720_v24 = vpop.f32.mrf.mxu3  ;;  %v701_v28 = vadd.f32 %v700_v26, %v677_v58 }
 0x167   : > { %v721_v13 = vadd.f32 %v720_v24, %v677_v58 }
 0x169   : > { %1189 = vrcp.f32 %v721_v13 }
 0x16a   : > { %1191 = vrcp.f32 %v701_v28 }
 0x16f   : > { %v1190_v29 = vpop.eup %1189 }
 0x170   : > { %v810_v37 = vmul.f32 %v1190_v29, %v721_v13  ;;  %v1192_v30 = vpop.eup %1191 }
 0x171   : > { %v809_v2 = vmul.f32 %v1192_v30, %v701_v28 }
 0x172   : > { %v816_v9 = vsub.f32 2.0, %v810_v37 }
 0x173   : > { %v815_v52 = vsub.f32 2.0, %v809_v2 }
 0x174   : > { %v822_v33 = vmul.f32 %v1190_v29, %v816_v9 }
 0x175   : > { %v821_v63 = vmul.f32 %v1192_v30, %v815_v52  ;;  %v1298_v52 = vmov 0.0  }
 0x176   : > { %v834_v34 = vrot.slane %v822_v33, 1  ;;  %272 = vst.msk [vmem:[#allocation3] sm:$0x3] %vm271_vm8, %v1298_v52 }
 0x177   : > { %v833_v59 = vrot.slane %v821_v63, 1  ;;  %936 = vst.msk [vmem:[#allocation8] sm:$0x3f] %vm934_vm7, %v1298_v52 }
 0x178   : > { %v846_v57 = vmul.f32 %v834_v34, %v721_v13 }
 0x179   : > { %v845_v47 = vmul.f32 %v833_v59, %v701_v28 }
 0x17a   : > { %v886_v55 = vsel %vm884_vm2, %v846_v57, %v822_v33 }
 0x17b   : > { %v897_v49 = vrot.slane %v886_v55, 6  ;;  %v885_v43 = vsel %vm884_vm2, %v845_v47, %v821_v63  ;;  %v917_v8 = vsel %vm901_vm5, %v886_v55, 0.0 }
 0x17c   : > { %v916_v18 = vsel %vm901_vm5, %v885_v43, 0.0 }
 0x17d   : > { %v902_v60 = vsel %vm901_vm5, %v885_v43, %v897_v49  ;;  %v918_v23 = vadd.f32 %v917_v8, %v916_v18 }
 0x17f   : > { %v740_v41 = vpop.f32.mrf.mxu2 }
 0x180   : > { %v741_v31 = vadd.f32 %v740_v41, %v677_v58  ;;  %v760_v12 = vpop.f32.mrf.mxu3 }
 0x181   : > { %v761_v32 = vadd.f32 %v760_v12, %v677_v58 }
 0x182   : > { %1193 = vrcp.f32 %v741_v31 }
 0x183   : > { %1195 = vrcp.f32 %v761_v32 }
 0x188   : > { %v1194_v4 = vpop.eup %1193 }
 0x189   : > { %v1196_v61 = vpop.eup %1195  ;;  %v811_v35 = vmul.f32 %v1194_v4, %v741_v31 }
 0x18a   : > { %v812_v36 = vmul.f32 %v1196_v61, %v761_v32 }
 0x18b   : > { %v817_v38 = vsub.f32 2.0, %v811_v35 }
 0x18c   : > { %v818_v39 = vsub.f32 2.0, %v812_v36 }
 0x18d   : > { %v823_v40 = vmul.f32 %v1194_v4, %v817_v38  ;;  %v915_v4 = vld [vmem:[#allocation3] sm:$0x3] }
 0x18e   : > { %v824_v45 = vmul.f32 %v1196_v61, %v818_v39 }
 0x18f   : > { %v835_v53 = vrot.slane %v823_v40, 1 }
 0x190   : > { %v836_v27 = vrot.slane %v824_v45, 1 }
 0x191   : > { %v847_v46 = vmul.f32 %v835_v53, %v741_v31 }
 0x192   : > { %v848_v48 = vmul.f32 %v836_v27, %v761_v32 }
 0x193   : > { %v887_v50 = vsel %vm884_vm2, %v847_v46, %v823_v40 }
 0x194   : > { %v888_v51 = vsel %vm884_vm2, %v848_v48, %v824_v45  ;;  %v898_v42 = vrot.slane %v887_v50, 4  ;;  %v919_v21 = vsel %vm901_vm5, %v887_v50, 0.0 }
 0x195   : > { %v899_v54 = vrot.slane %v888_v51, 2  ;;  %v920_v56 = vadd.f32 %v919_v21, %v918_v23  ;;  %v921_v26 = vsel %vm901_vm5, %v888_v51, 0.0 }
 0x197   : > { %v904_v62 = vsel %vm903_vm3, %v898_v42, %v899_v54  ;;  %v922_v29 = vadd.f32 %v921_v26, %v920_v56 }
 0x198   : > { %v906_v0 = vsel %vm905_vm4, %v902_v60, %v904_v62 }
 0x199   : > { %913 = vst [vmem:[#allocation2] sm:$0xff] %v906_v0 }
 0x1a7   : > { %v780_v5 = vpop.f32.mrf.mxu2 }
 0x1a8   : > { %v781_v10 = vadd.f32 %v780_v5, %v677_v58  ;;  %v800_v11 = vpop.f32.mrf.mxu3 }
 0x1a9   : > { %v801_v14 = vadd.f32 %v800_v11, %v677_v58 }
 0x1aa   : > { %1197 = vrcp.f32 %v781_v10 }
 0x1ab   : > { %1199 = vrcp.f32 %v801_v14 }
 0x1b0   : > { %v1198_v44 = vpop.eup %1197 }
 0x1b1   : > { %v1200_v7 = vpop.eup %1199  ;;  %v813_v1 = vmul.f32 %v1198_v44, %v781_v10 }
 0x1b2   : > { %v814_v17 = vmul.f32 %v1200_v7, %v801_v14 }
 0x1b3   : > { %v819_v20 = vsub.f32 2.0, %v813_v1 }
 0x1b4   : > { %v820_v6 = vsub.f32 2.0, %v814_v17 }
 0x1b5   : > { %v825_v22 = vmul.f32 %v1198_v44, %v819_v20 }
 0x1b6   : > { %v826_v25 = vmul.f32 %v1200_v7, %v820_v6 }
 0x1b7   : > { %v837_v19 = vrot.slane %v825_v22, 1 }
 0x1b8   : > { %v838_v24 = vrot.slane %v826_v25, 1  ;;  %v883_v30 = vsel %vm871_vm6, %v826_v25, 0.0 }
 0x1b9   : > { %v849_v58 = vmul.f32 %v837_v19, %v781_v10 }
 0x1ba   : > { %v850_v13 = vmul.f32 %v838_v24, %v801_v14 }
 0x1bb   : > { %v889_v28 = vsel %vm884_vm2, %v849_v58, %v825_v22 }
 0x1bc   : > { %v877_v37 = vsel %vm871_vm6, %v850_v13, 0.0  ;;  %v923_v41 = vsel %vm901_vm5, %v889_v28, 0.0 }
 0x1bd   : > { %v890_v9 = vsel %vm884_vm2, %v877_v37, %v883_v30  ;;  %v924_v31 = vadd.f32 %v923_v41, %v922_v29 }
 0x1be   : > { %v900_v12 = vrot.slane %v890_v9, 6  ;;  %v925_v32 = vsel %vm901_vm5, %v890_v9, 0.0 }
 0x1bf   : > { %v926_v2 = vadd.f32 %v925_v32, %v924_v31 }
 0x1c0   : > { %v907_v33 = vsel %vm901_vm5, %v889_v28, %v900_v12 }
 0x1c1   : > { %914 = vst [vmem:[#allocation2 + $0x8] sm:$0xf] %v907_v33  ;;  %927 = vadd.xlane.f32.xlu0 %v926_v2 }
 0x234   : > { %v928_v34 = vpop.xlane.xlu0 %927 }
 0x235   : > { %v929_v61 = vadd.f32 %v928_v34, %v915_v4 }
 0x237   : > { %931 = vst.msk [vmem:[#allocation3] sm:$0x3] %vm271_vm8, %v929_v61 }
 0x238 PF: > { %p1125_p8 = scmp.ne.s32.totalorder %s1284_s23, 1 }
 0x239   : > { %s946_s30 = sld [smem:[#allocation4]] (!%p1125_p8) }
 0x23a   : > { %940 = sbr.rel (%p1125_p8) target bundleno = 728 (0x2d8), region = 60 }
 0x23f   : > { %v1299_v35 = vmov 0   ;;  %v950_v63 = vld [vmem:[#allocation3 + $0x1] sm:$0x1]  ;;  %v947_v59 = vld [vmem:[#allocation3] sm:$0x1]  ;;  %v948_v45 = vstv %s946_s30  ;;  %v944_v43 = vld [vmem:[#allocation2] sm:$0xff]  ;;  %v993_v7 = vlaneseq }
 0x240   : > { %1201 = vset.pattern.permute.xlu0 %v1299_v35  ;;  %1202 = vrcp.f32 %v950_v63  ;;  %v962_v57 = vand.u32 2147483648, %v950_v63  ;;  %vm956_vm9 = vweird.f32 %v950_v63  ;;  %v960_v40 = vand.u32 2147483647, %v950_v63  ;;  %v945_v60 = vld [vmem:[#allocation2 + $0x8] sm:$0xf] }
 0x241   : > { %v949_v27 = vadd.f32 %v948_v45, %v947_v59  ;;  %v1300_v50 = vmov 269488144   ;;  %v980_v5 = vrot.slane %v944_v43, 7  ;;  %v981_v10 = vrot.slane %v945_v60, 7 }
 0x242   : > { %v963_v55 = vor.u32 1.1754944e-38, %v962_v57  ;;  %vm961_vm12 = vcmp.eq.f32.partialorder %v960_v40, 8.507059e+37  ;;  %v971_v51 = vunpack.c.l.s4 %v1300_v50  ;;  %vm995_vm13 = vcmp.lt.s32.totalorder %v993_v7, 768 }
 0x244   : > { %v972_v42 = vunpack.c.0.s8 %v971_v51 }
 0x246   : > { %v1203_v36 = vpop.eup %1202 }
 0x247   : > { %v952_v38 = vmul.f32 %v1203_v36, %v950_v63  ;;  %vm957_vm10 = vweird.f32 %v1203_v36 }
 0x248   : > { %vm958_vm11 = vmor %vm956_vm9, %vm957_vm10 }
 0x249   : > { %v953_v39 = vsub.f32 1.0, %v952_v38 }
 0x24b   : > { %v954_v53 = vmul.f32 %v1203_v36, %v953_v39 }
 0x24d   : > { %v955_v46 = vadd.f32 %v1203_v36, %v954_v53 }
 0x24f   : > { %v959_v47 = vsel %vm958_vm11, %v1203_v36, %v955_v46 }
 0x250   : > { %v964_v48 = vsel %vm961_vm12, %v963_v55, %v959_v47 }
 0x251   : > { %v965_v49 = vmul.f32 %v964_v48, %v949_v27 }
 0x253   : > { %968 = vperm.xlu0 %1201, %v965_v49  }
 0x2c5   : > { %v969_v54 = vpop.permute.xlu0 %968 }
 0x2c6   : > { %v973_v62 = vperm.slane %v969_v54, %v972_v42 }
 0x2c8   : > { %v974_v0 = vrot.slane %v973_v62, 7 }
 0x2ca   : > { %v976_v11 = vmul.f32 %v974_v0, %v944_v43  ;;  %v977_v14 = vmul.f32 %v974_v0, %v945_v60 }
 0x2cc   : > { %v984_v15 = vsub.f32 %v976_v11, %v980_v5  ;;  %v985_v44 = vsub.f32 %v977_v14, %v981_v10 }
 0x2ce   : > { %988 = vst [vmem:[#allocation1] sm:$0xff] %v984_v15 }
 0x2cf   : > { %989 = vst [vmem:[#allocation1 + $0x8] sm:$0xff] %v985_v44 }
 0x2d6   : > { %v991_v1 = vld [vmem:[#allocation1 + $0x1] ss:$2 sm:$0xff] }
 0x2d7   : > { %997 = vst.msk [vmem:[#allocation8] sm:$0x3f] %vm995_vm13, %v991_v1 }
 0x2d8 PF: > { %p1152_p9 = scmp.eq.s32.totalorder %s1065_s0, 1  ;;  %s1008_s8 = sshll.u32 %s1663_s6, 4  ;;  %s1009_s8 = int_to_ptr.hbm [resolvable:$true] %s1008_s8 }
 0x2d9   : > { %s1301_s9 = smov [#allocation8]  }
 0x2da   : > { %s1006_s10 = sshll.u32 %s1301_s9, 4  ;;  %s1007_s10 = int_to_ptr.vmem [resolvable:$true] %s1006_s10 }
 0x2db   : > { %1143 = dma.vmem_to_hbm [thread:$0]  (%p1152_p9), %s1007_s10, 96, %s1009_s8, [#allocation7]  }
 0x2dc   : > { %1279 = dma.done.wait (%p1152_p9), [#allocation7], 96  }
 0x2dd   : > { %1281 = vsyncadd (%p1152_p9), [#allocation7], 4294967200 }
 0x2de PF: > { %s19_s25 = sadd.s32 1, %s1292_s25   ;;  %s1664_s23 = smov %s1288_s24 }
 0x2df   : > { %p16_p10 = scmp.ge.s32.totalorder %s19_s25, 4   ;;  %s1665_s24 = smov %s1667_s26 }
 0x2e1   :  { %18 = sbr.rel (!%p16_p10) target bundleno = 5 (0x5), region = 90 }
 0x2e6   :  { %1022 = vsyncpa [#allocation6], 1 }
 0x2e7   :  { %1024 = vsyncpa [#allocation6 + $0x1], 1 }
 0x2e8   :  { %1025 = vsyncpa [#allocation7], 1 }
 0x2e9   :  { %1027 = vsyncpa [#allocation7 + $0x1], 1 }

</bundles_post_ra>
